<compile_context>
chip_gen: v5e
topology: v5e:2x2
jax: 0.10.0
libtpu: 0.0.40
codegen_flags: <defaults>
</compile_context>

<pallas_src>
import jax
import jax.numpy as jnp
from jax.experimental import pallas as pl
from jax.experimental.pallas import tpu as pltpu


def _round_up(n, m):
    return ((n + m - 1) // m) * m


def _pack_params(weights, biases, in_pad):
    """Pack parameters for the fused MLP kernel.

    Returns:
      w_slab   : bf16 (rows, OUT_PAD). Hidden-layer weights, zero padded and
                 stacked along rows; every block starts on a 16-row boundary
                 (bf16 sublane packing).
      extras   : f32 (round_up(num_hidden + 2, 8), OUT_PAD).
                 row i (< num_hidden) : bias of hidden layer i
                 row num_hidden       : final-layer weight as a single row
                 row num_hidden + 1   : final-layer bias in lane 0
      w_slices : ((row0, rows), ...) per hidden layer.
      out_pad  : lane width used for all hidden activations (128-multiple).
    """
    num_hidden = len(weights) - 1
    hidden_widths = [w.shape[1] for w in weights[:-1]]
    out_pad = max(_round_up(max(hidden_widths), 128), 128)
    # NOTE: all hidden widths here are <= 128; if a hidden layer ever exceeded
    # 128, out_pad should become per-layer instead of a single global max.

    blocks, w_slices = [], []
    off = 0
    for i in range(num_hidden):
        w = weights[i]
        d_in, d_out = w.shape
        rows = in_pad if i == 0 else out_pad
        wp = jnp.zeros((rows, out_pad), jnp.float32)
        wp = wp.at[:d_in, :d_out].set(w.astype(jnp.float32))
        blocks.append(wp)
        w_slices.append((off, rows))
        off += rows
    w_slab = jnp.concatenate(blocks, axis=0).astype(jnp.bfloat16)

    extras = jnp.zeros((_round_up(num_hidden + 2, 8), out_pad), jnp.float32)
    for i in range(num_hidden):
        b = biases[i]
        extras = extras.at[i, : b.shape[0]].set(b.astype(jnp.float32))
    w_last = weights[-1]                                   # (d_last, 1)
    extras = extras.at[num_hidden, : w_last.shape[0]].set(
        w_last[:, 0].astype(jnp.float32))
    extras = extras.at[num_hidden + 1, 0].set(biases[-1][0].astype(jnp.float32))

    return w_slab, extras, tuple(w_slices), out_pad


def _make_mlp_kernel(w_slices, num_hidden):
    """Fused MLP kernel: all matmuls + bias adds + ReLUs for one batch tile."""

    def kernel(x_ref, w_ref, e_ref, o_ref):
        h = x_ref[...]                                        # (TB, in_pad) bf16
        for i, (row0, rows) in enumerate(w_slices):
            w = w_ref[row0:row0 + rows, :]                    # (rows, OUT_PAD) bf16
            acc = jnp.dot(h, w, preferred_element_type=jnp.float32)
            acc = acc + e_ref[i:i + 1, :]                     # f32 bias (broadcast)
            acc = jnp.maximum(acc, 0.0)                       # ReLU on hidden layers
            # Feed the next MXU matmul bf16 operands; keep the last hidden
            # activation in f32 for the final reduction.
            h = acc.astype(jnp.bfloat16) if i + 1 < num_hidden else acc
        # Final Linear(d_last, 1): VPU multiply + lane reduction in f32 instead
        # of a padded 128-wide MXU matmul.  Padding lanes are exact zeros.
        w_last = e_ref[num_hidden:num_hidden + 1, :]          # (1, OUT_PAD) f32
        b_last = e_ref[num_hidden + 1:num_hidden + 2, 0:1]    # (1, 1)       f32
        out = jnp.sum(h * w_last, axis=-1, keepdims=True) + b_last
        o_ref[...] = out.astype(o_ref.dtype)

    return kernel


def neural_net_forward(x, weights, biases, *, tile_batch=4096):
    """Fused MLP forward.

    x:       (B, 8) float32
    weights: list of (in_i, out_i) float32 arrays (transposed vs. PyTorch)
    biases:  list of (out_i,) float32 arrays
    returns: (B, 1) float32
    """
    batch, in_dim = x.shape
    out_dim = weights[-1].shape[1]
    assert out_dim == 1, "NeuralNet always ends with Linear(dims[-1], 1)"
    num_hidden = len(weights) - 1

    in_pad = _round_up(in_dim, 16)            # bf16 sublane packing for x / W0
    w_slab, extras, w_slices, out_pad = _pack_params(weights, biases, in_pad)

    # ---- batch tiling ----------------------------------------------------
    # Large TB amortizes the ~0.35 us per-grid-step overhead; cap at 4096 so
    # the few live (TB, 128) f32 buffers stay far under v7x's 64 MiB VMEM.
    # Force >= 2 grid steps when the batch allows so v7x's 2 TensorCores both
    # get work (no effect on v5e/v6e).
    pb8 = _round_up(batch, 8)
    tb_cap = max(8, min(_round_up(tile_batch, 8), 4096))
    n_steps = pl.cdiv(pb8, min(tb_cap, pb8))
    if n_steps < 2 and pb8 >= 16:
        n_steps = 2
    tb = _round_up(pl.cdiv(pb8, n_steps), 8)
    padded_batch = tb * pl.cdiv(batch, tb)

    x = jnp.pad(x, ((0, padded_batch - batch), (0, in_pad - in_dim)))
    x = x.astype(jnp.bfloat16)                # bf16 MXU operand, f32 accumulate

    grid = (padded_batch // tb,)

    # Padded (actually issued) MXU + reduce work, bf16 in / f32 out traffic.
    flops = (2 * padded_batch * sum(rows * out_pad for _, rows in w_slices)
             + 2 * padded_batch * out_pad)
    bytes_accessed = (padded_batch * in_pad * 2
                      + padded_batch * out_dim * 4
                      + int(w_slab.size) * 2 + int(extras.size) * 4)

    kernel = _make_mlp_kernel(w_slices, num_hidden)

    fn = pl.pallas_call(
        kernel,
        out_shape=jax.ShapeDtypeStruct((padded_batch, out_dim), jnp.float32),
        grid=grid,
        in_specs=[
            pl.BlockSpec((tb, in_pad), lambda i: (i, 0)),    # streamed activations
            pl.BlockSpec(w_slab.shape, lambda i: (0, 0)),    # VMEM-resident weights (bf16)
            pl.BlockSpec(extras.shape, lambda i: (0, 0)),    # biases + last layer (f32)
        ],
        out_specs=pl.BlockSpec((tb, out_dim), lambda i: (i, 0)),
        compiler_params=pltpu.CompilerParams(
            dimension_semantics=("parallel",),
            vmem_limit_bytes=32 * 1024 * 1024,               # v5e default is only 16 MiB
        ),
        cost_estimate=pl.CostEstimate(
            flops=int(flops), transcendentals=0,
            bytes_accessed=int(bytes_accessed)),
    )
    out = fn(x, w_slab, extras)
    return out[:batch]


def init_params(key, dimensions, in_features=8, out_features=1):
    """Deterministic init mimicking PyTorch nn.Linear default U(-1/sqrt(fan_in), +).

    Returns weights already transposed to (in, out) for the kernel.
    """
    layer_dims = [in_features] + list(dimensions) + [out_features]
    weights, biases = [], []
    for i in range(len(layer_dims) - 1):
        fan_in, fan_out = layer_dims[i], layer_dims[i + 1]
        key, wk, bk = jax.random.split(key, 3)
        bound = 1.0 / jnp.sqrt(jnp.float32(fan_in))
        w = jax.random.uniform(wk, (fan_in, fan_out), jnp.float32, -bound, bound)
        b = jax.random.uniform(bk, (fan_out,), jnp.float32, -bound, bound)
        weights.append(w)
        biases.append(b)
    return weights, biases


def reference_forward(x, weights, biases):
    """Pure-JAX f32 reference (same math as the PyTorch Sequential)."""
    h = x
    n = len(weights)
    for i in range(n):
        h = h @ weights[i] + biases[i]
        if i < n - 1:
            h = jnp.maximum(h, 0.0)
    return h


if __name__ == "__main__":
    key = jax.random.PRNGKey(0)

    # NeuralNet(dimensions=[32, 16]): Linear(8,32)+ReLU, Linear(32,16)+ReLU, Linear(16,1)
    dimensions = [32, 16]

    key, xk, pk = jax.random.split(key, 3)
    weights, biases = init_params(pk, dimensions)

    # Multi-step grid path: batch 256 -> 2 tiles of 128 rows (>=2 steps for v7x).
    x = jax.random.normal(xk, (256, 8), jnp.float32)
    out = jax.block_until_ready(neural_net_forward(x, weights, biases))
    ref = reference_forward(x, weights, biases)
    assert out.shape == (256, 1), out.shape
    # bf16 matmul operands with f32 accumulation -> loosened tolerance vs f32 ref.
    assert jnp.allclose(out, ref, atol=5e-2, rtol=5e-2), (
        f"mismatch vs reference (tiled), max abs err {jnp.max(jnp.abs(out - ref))}")

    # Tiny-batch path: single grid step, tile clamps to the padded batch.
    x_small = jax.random.normal(key, (8, 8), jnp.float32)
    out_small = jax.block_until_ready(neural_net_forward(x_small, weights, biases))
    ref_small = reference_forward(x_small, weights, biases)
    assert out_small.shape == (8, 1), out_small.shape
    assert jnp.allclose(out_small, ref_small, atol=5e-2, rtol=5e-2), (
        f"mismatch vs reference (small), max abs err {jnp.max(jnp.abs(out_small - ref_small))}")

    print("KERNEL_OK")
</pallas_src>

<mosaic_0001>
module attributes {stable_mosaic.version = 11 : i64} {
  func.func @kernel(%arg0: i32, %arg1: memref<128x16xbf16, #tpu.memory_space<vmem>>, %arg2: memref<144x128xbf16, #tpu.memory_space<vmem>>, %arg3: memref<8x128xf32, #tpu.memory_space<vmem>>, %arg4: memref<128x1xf32, #tpu.memory_space<vmem>>) attributes {dimension_semantics = [#tpu.dimension_semantics<parallel>], iteration_bounds = array<i64: 2>, scalar_prefetch = 0 : i64, scratch_operands = 0 : i64, tpu.core_type = #tpu.core_type<tc>, window_params = [{transform_indices = @transform_0, window_bounds = array<i64: 128, 16>}, {pipeline_mode = #tpu.pipeline_mode<synchronous>, transform_indices = @transform_1, window_bounds = array<i64: 144, 128>}, {pipeline_mode = #tpu.pipeline_mode<synchronous>, transform_indices = @transform_2, window_bounds = array<i64: 8, 128>}, {transform_indices = @transform_3, window_bounds = array<i64: 128, 1>}]} {
    %c0 = arith.constant 0 : index
    %c0_0 = arith.constant 0 : index
    %0 = vector.load %arg1[%c0, %c0_0] : memref<128x16xbf16, #tpu.memory_space<vmem>>, vector<128x16xbf16>
    %c0_1 = arith.constant 0 : index
    %c0_2 = arith.constant 0 : index
    %1 = vector.load %arg2[%c0_1, %c0_2] : memref<144x128xbf16, #tpu.memory_space<vmem>>, vector<16x128xbf16>
    %cst = arith.constant dense<0.000000e+00> : vector<128x128xf32>
    %2 = tpu.matmul %0, %1, %cst {dimension_numbers = #tpu.dot_dimension_numbers<[1], [0], [0], [1], [0, 0, 1, 1], [], []>} : vector<128x16xbf16>, vector<16x128xbf16>, vector<128x128xf32> -> vector<128x128xf32>
    %c0_3 = arith.constant 0 : index
    %c0_4 = arith.constant 0 : index
    %3 = vector.load %arg3[%c0_3, %c0_4] : memref<8x128xf32, #tpu.memory_space<vmem>>, vector<1x128xf32>
    %4 = vector.broadcast %3 : vector<1x128xf32> to vector<128x128xf32>
    %5 = arith.addf %2, %4 : vector<128x128xf32>
    %cst_5 = arith.constant 0.000000e+00 : f32
    %6 = vector.broadcast %cst_5 : f32 to vector<128x128xf32>
    %7 = arith.maximumf %5, %6 : vector<128x128xf32>
    %8 = arith.truncf %7 : vector<128x128xf32> to vector<128x128xbf16>
    %c16 = arith.constant 16 : index
    %c0_6 = arith.constant 0 : index
    %9 = vector.load %arg2[%c16, %c0_6] : memref<144x128xbf16, #tpu.memory_space<vmem>>, vector<128x128xbf16>
    %cst_7 = arith.constant dense<0.000000e+00> : vector<128x128xf32>
    %10 = tpu.matmul %8, %9, %cst_7 {dimension_numbers = #tpu.dot_dimension_numbers<[1], [0], [0], [1], [0, 0, 1, 1], [], []>} : vector<128x128xbf16>, vector<128x128xbf16>, vector<128x128xf32> -> vector<128x128xf32>
    %c1 = arith.constant 1 : index
    %c0_8 = arith.constant 0 : index
    %11 = vector.load %arg3[%c1, %c0_8] : memref<8x128xf32, #tpu.memory_space<vmem>>, vector<1x128xf32>
    %12 = vector.broadcast %11 : vector<1x128xf32> to vector<128x128xf32>
    %13 = arith.addf %10, %12 : vector<128x128xf32>
    %cst_9 = arith.constant 0.000000e+00 : f32
    %14 = vector.broadcast %cst_9 : f32 to vector<128x128xf32>
    %15 = arith.maximumf %13, %14 : vector<128x128xf32>
    %c2 = arith.constant 2 : index
    %c0_10 = arith.constant 0 : index
    %16 = vector.load %arg3[%c2, %c0_10] : memref<8x128xf32, #tpu.memory_space<vmem>>, vector<1x128xf32>
    %c3 = arith.constant 3 : index
    %c0_11 = arith.constant 0 : index
    %17 = vector.load %arg3[%c3, %c0_11] : memref<8x128xf32, #tpu.memory_space<vmem>>, vector<1x1xf32>
    %18 = vector.broadcast %16 : vector<1x128xf32> to vector<128x128xf32>
    %19 = arith.mulf %15, %18 : vector<128x128xf32>
    %cst_12 = arith.constant dense<0.000000e+00> : vector<128xf32>
    %20 = vector.multi_reduction <add>, %19, %cst_12 [1] : vector<128x128xf32> to vector<128xf32>
    %21 = vector.shape_cast %20 : vector<128xf32> to vector<128x1xf32>
    %22 = vector.broadcast %17 : vector<1x1xf32> to vector<128x1xf32>
    %23 = arith.addf %21, %22 : vector<128x1xf32>
    %c0_13 = arith.constant 0 : index
    %c0_14 = arith.constant 0 : index
    %24 = vector.load %arg4[%c0_13, %c0_14] : memref<128x1xf32, #tpu.memory_space<vmem>>, vector<128x1xf32>
    tpu.vector_store %arg4[%c0_13, %c0_14], %23 {strides = array<i32>} : memref<128x1xf32, #tpu.memory_space<vmem>>, vector<128x1xf32>,
    return
  }
  func.func @transform_0(%arg0: i32) -> (i32, i32) {
    %c0_i32 = arith.constant 0 : i32
    %c0_i32_0 = arith.constant 0 : i32
    return %arg0, %c0_i32 : i32, i32
  }
  func.func @transform_1(%arg0: i32) -> (i32, i32) {
    %c0_i32 = arith.constant 0 : i32
    %c0_i32_0 = arith.constant 0 : i32
    %c0_i32_1 = arith.constant 0 : i32
    return %c0_i32, %c0_i32_0 : i32, i32
  }
  func.func @transform_2(%arg0: i32) -> (i32, i32) {
    %c0_i32 = arith.constant 0 : i32
    %c0_i32_0 = arith.constant 0 : i32
    %c0_i32_1 = arith.constant 0 : i32
    return %c0_i32, %c0_i32_0 : i32, i32
  }
  func.func @transform_3(%arg0: i32) -> (i32, i32) {
    %c0_i32 = arith.constant 0 : i32
    %c0_i32_0 = arith.constant 0 : i32
    return %arg0, %c0_i32 : i32, i32
  }
}

</mosaic_0001>

<bundles_post_ra>
// kernel: tpu_custom_call.1
= control target key start
LH: loop header
LB: loop body
LE: loop exit
PB: predicated region body
PF: predicated region fallthrough
CT: control target
= control target key end

     0   :  { %s764_s12 = smov 0   ;;  %s902_s0 = inlined_call_operand.vmem [shape: bf16[256,16], index: 0, kind: input, shape index: {}]   ;;  %s903_s1 = inlined_call_operand.vmem [shape: bf16[144,128], index: 1, kind: input, shape index: {}]   ;;  %s904_s2 = inlined_call_operand.vmem [shape: f32[8,128], index: 2, kind: input, shape index: {}]   ;;  %s905_s3 = inlined_call_operand.vmem [shape: f32[256,1], index: 3, kind: output, shape index: {}]  }
   0x1 LB: > { %s611_s13 = sadd.s32 4294967295, %s742_s12   ;;  %p615_p0 = scmp.ge.s32.totalorder %s742_s12, 1  ;;  %s742_s12 = sphi %s764_s12, %s13_s12  }
   0x2   : > { %p138_p1 = scmp.lt.s32.totalorder %s742_s12, 3 }
   0x4   : > { %p139_p2 = pnand %p615_p0, %p138_p1 }
   0x5   : > { %s616_s16 = sshll.u32 (!%p139_p2), %s611_s13, 4 }
   0x6   : > { %142 = sbr.rel (%p139_p2) target bundleno = 532 (0x214), region = 32  ;;  %p163_p3 = scmp.lt.s32.totalorder (!%p139_p2), %s616_s16, 31 }
   0xb   : > { %v706_v0 = vld [vmem:[%s903_s1] sm:$0xff]  ;;  %s907_s16 = smov (!%p163_p3, %s616_s16), 31  ;;  %vm241_vm0 = vcmask 130048   ;;  %v713_v6 = vld [vmem:[%s903_s1 + $0x38] sm:$0xff]  ;;  %v712_v7 = vld [vmem:[%s903_s1 + $0x30] sm:$0xff]  ;;  %vm538_vm1 = vcmask 7168  }
   0xc   : > { %273 = vmatpush.bf16.msra.mxu0 %v706_v0  ;;  %715 = vmatpush.bf16.msra.mxu3 %v706_v0  ;;  %s617_s17 = sshll.u32 %s907_s16, 2  ;;  %v714_v5 = vld [vmem:[%s903_s1 + $0x40] sm:$0xff]  ;;  %v711_v9 = vld [vmem:[%s903_s1 + $0x28] sm:$0xff]  ;;  %v709_v14 = vld [vmem:[%s903_s1 + $0x18] sm:$0xff]  ;;  %s619_s18 = sshll.u32 %s907_s16, 3 }
   0xd   : > { %s166_s20 = scalar_lea.vmem %s902_s0, %s617_s17  ;;  %405 = vmatpush.bf16.msra.mxu1 %v714_v5  ;;  %716 = vmatpush.bf16.msra.mxu2 %v714_v5  ;;  %v710_v13 = vld [vmem:[%s903_s1 + $0x20] sm:$0xff]  ;;  %v708_v15 = vld [vmem:[%s903_s1 + $0x10] sm:$0xff]  ;;  %v707_v16 = vld [vmem:[%s903_s1 + $0x8] sm:$0xff]  ;;  %s862_s23 = scalar_lea.vmem %s905_s3, %s619_s18 }
   0xe   : > { %v698_v1 = vld [vmem:[%s166_s20] sm:$0xff]  ;;  %v699_v2 = vld [vmem:[%s166_s20 + $0x8] sm:$0xff]  ;;  %v700_v3 = vld [vmem:[%s166_s20 + $0x10] sm:$0xff] }
   0xf   : > { %656 = vmatmul.msk.bf16.vlgmr.msra.gmra.mxu0 %vm241_vm0, %v698_v1  ;;  %v703_v4 = vld [vmem:[%s166_s20 + $0x28] sm:$0xff]  ;;  %v701_v8 = vld [vmem:[%s166_s20 + $0x18] sm:$0xff]  ;;  %v704_v10 = vld [vmem:[%s166_s20 + $0x30] sm:$0xff] }
  0x10   : > { %661 = vmatmul.msk.bf16.vlgmr.msra.gmra.mxu3 %vm241_vm0, %v703_v4  ;;  %v702_v11 = vld [vmem:[%s166_s20 + $0x20] sm:$0xff]  ;;  %v705_v12 = vld [vmem:[%s166_s20 + $0x38] sm:$0xff] }
  0x11   : > { %406 = vmatpush.bf16.msra.mxu1 %v713_v6  ;;  %717 = vmatpush.bf16.msra.mxu2 %v713_v6  ;;  %v732_v18 = vld [vmem:[%s904_s2] ss:$0 sm:$0xff] }
  0x15   : > { %407 = vmatpush.bf16.msra.mxu1 %v712_v7  ;;  %718 = vmatpush.bf16.msra.mxu2 %v712_v7 }
  0x19   : > { %408 = vmatpush.bf16.msra.mxu1 %v711_v9  ;;  %719 = vmatpush.bf16.msra.mxu2 %v711_v9 }
  0x1d   : > { %409 = vmatpush.bf16.msra.mxu1 %v710_v13  ;;  %720 = vmatpush.bf16.msra.mxu2 %v710_v13  ;;  %v825_v13 = vld [vmem:[%s904_s2 + $0x2] ss:$0 sm:$0xff] }
  0x1f   : > { %657 = vmatmul.msk.bf16.gmra.mxu0 %vm241_vm0, %v699_v2 }
  0x20   : > { %662 = vmatmul.msk.bf16.gmra.mxu3 %vm241_vm0, %v704_v10  ;;  %v819_v10 = vld [vmem:[%s904_s2 + $0x1] ss:$0 sm:$0xff] }
  0x21   : > { %410 = vmatpush.bf16.msra.mxu1 %v709_v14  ;;  %721 = vmatpush.bf16.msra.mxu2 %v709_v14 }
  0x25   : > { %411 = vmatpush.bf16.msra.mxu1 %v708_v15  ;;  %722 = vmatpush.bf16.msra.mxu2 %v708_v15 }
  0x29   : > { %412 = vmatpush.bf16.msra.mxu1 %v707_v16  ;;  %723 = vmatpush.bf16.msra.mxu2 %v707_v16 }
  0x2f   : > { %658 = vmatmul.msk.bf16.gmra.mxu0 %vm241_vm0, %v700_v3 }
  0x30   : > { %663 = vmatmul.msk.bf16.gmra.mxu3 %vm241_vm0, %v705_v12 }
  0x3f   : > { %659 = vmatmul.msk.bf16.gmra.mxu0 %vm241_vm0, %v701_v8 }
  0x4f   : > { %660 = vmatmul.msk.bf16.gmra.mxu0 %vm241_vm0, %v702_v11 }
  0x8c   : > { %v275_v17 = vpop.f32.mrf.mxu0 }
  0x8d   : > { %v276_v19 = vadd.f32 %v732_v18, %v275_v17 }
  0x8f   : > { %v315_v22 = vmax.f32 %v276_v19, 0.0 }
  0x93   : > { %v300_v47 = vpop.f32.mrf.mxu3 }
  0x94   : > { %v277_v20 = vpop.f32.mrf.mxu0  ;;  %v301_v56 = vadd.f32 %v732_v18, %v300_v47 }
  0x95   : > { %v278_v21 = vadd.f32 %v732_v18, %v277_v20 }
  0x96   : > { %v325_v58 = vmax.f32 %v301_v56, 0.0 }
  0x97   : > { %v316_v23 = vmax.f32 %v278_v21, 0.0 }
  0x99   : > { %v331_v24 = vpack.c.bf16 %v316_v23, %v315_v22 }
  0x9b   : > { %413 = vmatmul.bf16.vlgmr.msra.gmra.mxu1 %v331_v24  ;;  %v302_v51 = vpop.f32.mrf.mxu3 }
  0x9c   : > { %v280_v25 = vpop.f32.mrf.mxu0  ;;  %v303_v57 = vadd.f32 %v732_v18, %v302_v51 }
  0x9d   : > { %v281_v26 = vadd.f32 %v732_v18, %v280_v25 }
  0x9e   : > { %v326_v59 = vmax.f32 %v303_v57, 0.0 }
  0x9f   : > { %v317_v29 = vmax.f32 %v281_v26, 0.0 }
  0xa0   : > { %v336_v60 = vpack.c.bf16 %v326_v59, %v325_v58 }
  0xa3   : > { %v305_v55 = vpop.f32.mrf.mxu3 }
  0xa4   : > { %v282_v27 = vpop.f32.mrf.mxu0  ;;  %v306_v62 = vadd.f32 %v732_v18, %v305_v55 }
  0xa5   : > { %v283_v28 = vadd.f32 %v732_v18, %v282_v27 }
  0xa6   : > { %v327_v1 = vmax.f32 %v306_v62, 0.0 }
  0xa7   : > { %v318_v30 = vmax.f32 %v283_v28, 0.0 }
  0xa9   : > { %v332_v31 = vpack.c.bf16 %v318_v30, %v317_v29 }
  0xab   : > { %418 = vmatmul.bf16.gmra.mxu1 %v332_v31  ;;  %v307_v61 = vpop.f32.mrf.mxu3 }
  0xac   : > { %v285_v32 = vpop.f32.mrf.mxu0  ;;  %v308_v63 = vadd.f32 %v732_v18, %v307_v61 }
  0xad   : > { %v286_v33 = vadd.f32 %v732_v18, %v285_v32 }
  0xae   : > { %v328_v2 = vmax.f32 %v308_v63, 0.0 }
  0xaf   : > { %v319_v36 = vmax.f32 %v286_v33, 0.0 }
  0xb0   : > { %v337_v3 = vpack.c.bf16 %v328_v2, %v327_v1 }
  0xb3   : > { %v310_v0 = vpop.f32.mrf.mxu3 }
  0xb4   : > { %v287_v34 = vpop.f32.mrf.mxu0  ;;  %v311_v5 = vadd.f32 %v732_v18, %v310_v0 }
  0xb5   : > { %v288_v35 = vadd.f32 %v732_v18, %v287_v34 }
  0xb6   : > { %v329_v7 = vmax.f32 %v311_v5, 0.0 }
  0xb7   : > { %v320_v37 = vmax.f32 %v288_v35, 0.0 }
  0xb9   : > { %v333_v38 = vpack.c.bf16 %v320_v37, %v319_v36 }
  0xbb   : > { %423 = vmatmul.bf16.gmra.mxu1 %v333_v38  ;;  %v312_v4 = vpop.f32.mrf.mxu3 }
  0xbc   : > { %v290_v39 = vpop.f32.mrf.mxu0  ;;  %v313_v6 = vadd.f32 %v732_v18, %v312_v4 }
  0xbd   : > { %v291_v40 = vadd.f32 %v732_v18, %v290_v39 }
  0xbe   : > { %v330_v8 = vmax.f32 %v313_v6, 0.0  ;;  %v735_v6 = vld [vmem:[%s904_s2 + $0x3] ss:$0 sm:$0xff] }
  0xbf   : > { %v321_v43 = vmax.f32 %v291_v40, 0.0 }
  0xc0   : > { %v338_v9 = vpack.c.bf16 %v330_v8, %v329_v7 }
  0xc4   : > { %v292_v41 = vpop.f32.mrf.mxu0 }
  0xc5   : > { %v293_v42 = vadd.f32 %v732_v18, %v292_v41 }
  0xc7   : > { %v322_v44 = vmax.f32 %v293_v42, 0.0 }
  0xc9   : > { %v334_v45 = vpack.c.bf16 %v322_v44, %v321_v43 }
  0xcb   : > { %428 = vmatmul.bf16.gmra.mxu1 %v334_v45 }
  0xcc   : > { %v295_v46 = vpop.f32.mrf.mxu0 }
  0xcd   : > { %v296_v48 = vadd.f32 %v732_v18, %v295_v46 }
  0xcf   : > { %v323_v52 = vmax.f32 %v296_v48, 0.0 }
  0xd4   : > { %v297_v49 = vpop.f32.mrf.mxu0 }
  0xd5   : > { %v298_v50 = vadd.f32 %v732_v18, %v297_v49 }
  0xd7   : > { %v324_v53 = vmax.f32 %v298_v50, 0.0 }
  0xd9   : > { %v335_v54 = vpack.c.bf16 %v324_v53, %v323_v52 }
  0xdb   : > { %433 = vmatmul.bf16.vlgmr.msra.gmra.mxu2 %v335_v54 }
  0xeb   : > { %438 = vmatmul.bf16.gmra.mxu2 %v336_v60 }
  0xfb   : > { %443 = vmatmul.bf16.gmra.mxu2 %v337_v3 }
 0x10b   : > { %448 = vmatmul.bf16.gmra.mxu2 %v338_v9 }
 0x118   : > { %v414_v11 = vpop.f32.mrf.mxu1 }
 0x119   : > { %v415_v12 = vadd.f32 %v819_v10, %v414_v11 }
 0x11b   : > { %v454_v14 = vmax.f32 %v415_v12, 0.0 }
 0x11d   : > { %v473_v15 = vmul.f32 %v825_v13, %v454_v14 }
 0x11f   : > { %489 = vadd.xlane.f32.xlu0 %v473_v15 }
 0x120   : > { %v416_v16 = vpop.f32.mrf.mxu1 }
 0x121   : > { %v417_v17 = vadd.f32 %v819_v10, %v416_v16 }
 0x123   : > { %v455_v18 = vmax.f32 %v417_v17, 0.0 }
 0x125   : > { %v474_v19 = vmul.f32 %v825_v13, %v455_v18 }
 0x127   : > { %491 = vadd.xlane.f32.xlu0 %v474_v19 }
 0x128   : > { %v419_v20 = vpop.f32.mrf.mxu1 }
 0x129   : > { %v420_v21 = vadd.f32 %v819_v10, %v419_v20 }
 0x12b   : > { %v456_v22 = vmax.f32 %v420_v21, 0.0 }
 0x12d   : > { %v475_v23 = vmul.f32 %v825_v13, %v456_v22 }
 0x12f   : > { %493 = vadd.xlane.f32.xlu1 %v475_v23 }
 0x130   : > { %v421_v24 = vpop.f32.mrf.mxu1 }
 0x131   : > { %v422_v25 = vadd.f32 %v819_v10, %v421_v24 }
 0x133   : > { %v457_v26 = vmax.f32 %v422_v25, 0.0 }
 0x135   : > { %v476_v27 = vmul.f32 %v825_v13, %v457_v26 }
 0x137   : > { %495 = vadd.xlane.f32.xlu1 %v476_v27 }
 0x138   : > { %v424_v28 = vpop.f32.mrf.mxu1 }
 0x139   : > { %v425_v29 = vadd.f32 %v819_v10, %v424_v28 }
 0x13b   : > { %v458_v30 = vmax.f32 %v425_v29, 0.0 }
 0x13d   : > { %v477_v31 = vmul.f32 %v825_v13, %v458_v30 }
 0x13f   : > { %497 = vadd.xlane.f32.xlu2 %v477_v31 }
 0x140   : > { %v426_v32 = vpop.f32.mrf.mxu1 }
 0x141   : > { %v427_v33 = vadd.f32 %v819_v10, %v426_v32 }
 0x143   : > { %v459_v34 = vmax.f32 %v427_v33, 0.0 }
 0x145   : > { %v478_v35 = vmul.f32 %v825_v13, %v459_v34 }
 0x147   : > { %499 = vadd.xlane.f32.xlu2 %v478_v35 }
 0x148   : > { %v429_v36 = vpop.f32.mrf.mxu1 }
 0x149   : > { %v430_v37 = vadd.f32 %v819_v10, %v429_v36 }
 0x14b   : > { %v460_v38 = vmax.f32 %v430_v37, 0.0 }
 0x14d   : > { %v479_v39 = vmul.f32 %v825_v13, %v460_v38 }
 0x14f   : > { %501 = vadd.xlane.f32.xlu0 %v479_v39 }
 0x150   : > { %v431_v40 = vpop.f32.mrf.mxu1 }
 0x151   : > { %v432_v41 = vadd.f32 %v819_v10, %v431_v40 }
 0x153   : > { %v461_v42 = vmax.f32 %v432_v41, 0.0 }
 0x155   : > { %v480_v43 = vmul.f32 %v825_v13, %v461_v42 }
 0x157   : > { %503 = vadd.xlane.f32.xlu1 %v480_v43 }
 0x15e   : > { %v434_v44 = vpop.f32.mrf.mxu2 }
 0x15f   : > { %v435_v45 = vadd.f32 %v819_v10, %v434_v44 }
 0x161   : > { %v462_v46 = vmax.f32 %v435_v45, 0.0 }
 0x163   : > { %v481_v47 = vmul.f32 %v825_v13, %v462_v46 }
 0x165   : > { %505 = vadd.xlane.f32.xlu2 %v481_v47 }
 0x166   : > { %v436_v48 = vpop.f32.mrf.mxu2 }
 0x167   : > { %v437_v49 = vadd.f32 %v819_v10, %v436_v48 }
 0x169   : > { %v463_v50 = vmax.f32 %v437_v49, 0.0 }
 0x16b   : > { %v482_v51 = vmul.f32 %v825_v13, %v463_v50 }
 0x16d   : > { %507 = vadd.xlane.f32.xlu0 %v482_v51 }
 0x16e   : > { %v439_v52 = vpop.f32.mrf.mxu2 }
 0x16f   : > { %v440_v53 = vadd.f32 %v819_v10, %v439_v52 }
 0x171   : > { %v464_v54 = vmax.f32 %v440_v53, 0.0 }
 0x173   : > { %v483_v55 = vmul.f32 %v825_v13, %v464_v54 }
 0x175   : > { %509 = vadd.xlane.f32.xlu1 %v483_v55 }
 0x176   : > { %v441_v56 = vpop.f32.mrf.mxu2 }
 0x177   : > { %v442_v57 = vadd.f32 %v819_v10, %v441_v56 }
 0x179   : > { %v465_v58 = vmax.f32 %v442_v57, 0.0 }
 0x17b   : > { %v484_v59 = vmul.f32 %v825_v13, %v465_v58 }
 0x17d   : > { %511 = vadd.xlane.f32.xlu2 %v484_v59 }
 0x17e   : > { %v444_v60 = vpop.f32.mrf.mxu2 }
 0x17f   : > { %v445_v61 = vadd.f32 %v819_v10, %v444_v60 }
 0x181   : > { %v466_v62 = vmax.f32 %v445_v61, 0.0 }
 0x183   : > { %v485_v63 = vmul.f32 %v825_v13, %v466_v62 }
 0x185   : > { %513 = vadd.xlane.f32.xlu0 %v485_v63 }
 0x186   : > { %v446_v0 = vpop.f32.mrf.mxu2 }
 0x187   : > { %v447_v1 = vadd.f32 %v819_v10, %v446_v0 }
 0x189   : > { %v467_v2 = vmax.f32 %v447_v1, 0.0 }
 0x18b   : > { %v486_v3 = vmul.f32 %v825_v13, %v467_v2 }
 0x18d   : > { %515 = vadd.xlane.f32.xlu1 %v486_v3 }
 0x18e   : > { %v449_v4 = vpop.f32.mrf.mxu2 }
 0x18f   : > { %v450_v5 = vadd.f32 %v819_v10, %v449_v4 }
 0x191   : > { %v468_v7 = vmax.f32 %v450_v5, 0.0 }
 0x192   : > { %v490_v8 = vpop.xlane.xlu0 %489 }
 0x193   : > { %v522_v9 = vadd.f32 %v735_v6, %v490_v8  ;;  %v487_v11 = vmul.f32 %v825_v13, %v468_v7 }
 0x195   : > { %539 = vst.msk [vmem:[%s862_s23] sm:$0xff] %vm538_vm1, %v522_v9  ;;  %517 = vadd.xlane.f32.xlu2 %v487_v11 }
 0x196   : > { %v451_v12 = vpop.f32.mrf.mxu2 }
 0x197   : > { %v452_v14 = vadd.f32 %v819_v10, %v451_v12 }
 0x199   : > { %v469_v15 = vmax.f32 %v452_v14, 0.0 }
 0x19a   : > { %v492_v16 = vpop.xlane.xlu0 %491 }
 0x19b   : > { %v523_v17 = vadd.f32 %v735_v6, %v492_v16  ;;  %v488_v18 = vmul.f32 %v825_v13, %v469_v15 }
 0x19d   : > { %540 = vst.msk [vmem:[%s862_s23 + $0x8] sm:$0xff] %vm538_vm1, %v523_v17  ;;  %519 = vadd.xlane.f32.xlu0 %v488_v18 }
 0x1a2   : > { %v494_v19 = vpop.xlane.xlu1 %493 }
 0x1a3   : > { %v524_v20 = vadd.f32 %v735_v6, %v494_v19 }
 0x1a5   : > { %541 = vst.msk [vmem:[%s862_s23 + $0x10] sm:$0xff] %vm538_vm1, %v524_v20 }
 0x1aa   : > { %v496_v21 = vpop.xlane.xlu1 %495 }
 0x1ab   : > { %v525_v22 = vadd.f32 %v735_v6, %v496_v21 }
 0x1ad   : > { %542 = vst.msk [vmem:[%s862_s23 + $0x18] sm:$0xff] %vm538_vm1, %v525_v22 }
 0x1b2   : > { %v498_v10 = vpop.xlane.xlu2 %497 }
 0x1b3   : > { %v526_v23 = vadd.f32 %v735_v6, %v498_v10 }
 0x1b5   : > { %543 = vst.msk [vmem:[%s862_s23 + $0x20] sm:$0xff] %vm538_vm1, %v526_v23 }
 0x1ba   : > { %v500_v13 = vpop.xlane.xlu2 %499 }
 0x1bb   : > { %v527_v24 = vadd.f32 %v735_v6, %v500_v13 }
 0x1bd   : > { %544 = vst.msk [vmem:[%s862_s23 + $0x28] sm:$0xff] %vm538_vm1, %v527_v24 }
 0x1c2   : > { %v502_v25 = vpop.xlane.xlu0 %501 }
 0x1c3   : > { %v528_v26 = vadd.f32 %v735_v6, %v502_v25 }
 0x1c5   : > { %545 = vst.msk [vmem:[%s862_s23 + $0x30] sm:$0xff] %vm538_vm1, %v528_v26 }
 0x1ca   : > { %v504_v27 = vpop.xlane.xlu1 %503 }
 0x1cb   : > { %v529_v28 = vadd.f32 %v735_v6, %v504_v27 }
 0x1cd   : > { %546 = vst.msk [vmem:[%s862_s23 + $0x38] sm:$0xff] %vm538_vm1, %v529_v28 }
 0x1d8   : > { %v506_v29 = vpop.xlane.xlu2 %505 }
 0x1d9   : > { %v530_v30 = vadd.f32 %v735_v6, %v506_v29 }
 0x1db   : > { %547 = vst.msk [vmem:[%s862_s23 + $0x40] sm:$0xff] %vm538_vm1, %v530_v30 }
 0x1e0   : > { %v508_v31 = vpop.xlane.xlu0 %507 }
 0x1e1   : > { %v531_v32 = vadd.f32 %v735_v6, %v508_v31 }
 0x1e3   : > { %548 = vst.msk [vmem:[%s862_s23 + $0x48] sm:$0xff] %vm538_vm1, %v531_v32 }
 0x1e8   : > { %v510_v33 = vpop.xlane.xlu1 %509 }
 0x1e9   : > { %v532_v34 = vadd.f32 %v735_v6, %v510_v33 }
 0x1eb   : > { %549 = vst.msk [vmem:[%s862_s23 + $0x50] sm:$0xff] %vm538_vm1, %v532_v34 }
 0x1f0   : > { %v512_v35 = vpop.xlane.xlu2 %511 }
 0x1f1   : > { %v533_v36 = vadd.f32 %v735_v6, %v512_v35 }
 0x1f3   : > { %550 = vst.msk [vmem:[%s862_s23 + $0x58] sm:$0xff] %vm538_vm1, %v533_v36 }
 0x1f8   : > { %v514_v37 = vpop.xlane.xlu0 %513 }
 0x1f9   : > { %v534_v38 = vadd.f32 %v735_v6, %v514_v37 }
 0x1fb   : > { %551 = vst.msk [vmem:[%s862_s23 + $0x60] sm:$0xff] %vm538_vm1, %v534_v38 }
 0x200   : > { %v516_v39 = vpop.xlane.xlu1 %515 }
 0x201   : > { %v535_v40 = vadd.f32 %v735_v6, %v516_v39 }
 0x203   : > { %552 = vst.msk [vmem:[%s862_s23 + $0x68] sm:$0xff] %vm538_vm1, %v535_v40 }
 0x208   : > { %v518_v41 = vpop.xlane.xlu2 %517 }
 0x209   : > { %v536_v42 = vadd.f32 %v735_v6, %v518_v41 }
 0x20b   : > { %553 = vst.msk [vmem:[%s862_s23 + $0x70] sm:$0xff] %vm538_vm1, %v536_v42 }
 0x210   : > { %v520_v43 = vpop.xlane.xlu0 %519 }
 0x211   : > { %v537_v44 = vadd.f32 %v735_v6, %v520_v43 }
 0x213   : > { %554 = vst.msk [vmem:[%s862_s23 + $0x78] sm:$0xff] %vm538_vm1, %v537_v44 }
 0x214 PF: > { %s13_s12 = sadd.s32 1, %s742_s12  }
 0x215   : > { %p10_p4 = scmp.ge.s32.totalorder %s13_s12, 4  }
 0x217   :  { %12 = sbr.rel (!%p10_p4) target bundleno = 1 (0x1), region = 62 }

</bundles_post_ra>
